<compile_context>
chip_gen: v5e
topology: v5e:2x2
jax: 0.10.0
libtpu: 0.0.40
codegen_flags: <defaults>
</compile_context>

<pallas_src>
import functools

import jax
import jax.numpy as jnp
from jax import lax
from jax.experimental import pallas as pl
from jax.experimental.pallas import tpu as pltpu

EPS = 1e-5
LANE = 128
SUBLANE = 8


def _round_up(x, m):
    return (x + m - 1) // m * m


def _bucket_batch(n):
    """Bucketed batch padding: one compiled kernel serves many batch sizes."""
    if n <= 1024:
        return max(SUBLANE, pl.next_power_of_2(n))
    return _round_up(n, 1024)


@functools.lru_cache(maxsize=1)
def _vmem_capacity_bytes():
    try:
        return int(pltpu.get_tpu_info().vmem_capacity_bytes)
    except Exception:
        return 64 * 1024 * 1024  # conservative (v7x-sized) fallback


def _fused_vmem_budget():
    # Leave headroom for Mosaic internal scratch / output staging:
    #   v7x (64 MiB VMEM/TC)   -> ~48 MiB fused budget
    #   v5e/v6e (128 MiB VMEM) -> ~102 MiB fused budget
    cap = _vmem_capacity_bytes()
    return min(cap - 16 * 1024 * 1024, int(cap * 0.8))


# ---------------------------------------------------------------------------
# One-time parameter packing
# ---------------------------------------------------------------------------
def prepack_params(params):
    """Pad to lane-dense shapes, cast weights to bf16, fold BN affine into the
    following Linear.  Call once; reuse the result for every forward call.

    params = (w0, b0, g0, be0, w1, b1, g1, be1, w2, b2), f32, weights (in, out).
    Returns (packed_arrays, out_dim)."""
    w0, b0, g0, be0, w1, b1, g1, be1, w2, b2 = params
    in_dim, hid_dim = w0.shape
    out_dim = w2.shape[1]
    din_p = _round_up(in_dim, LANE)
    hid_p = _round_up(hid_dim, LANE)
    out_p = _round_up(out_dim, LANE)

    # Fold:  (c*inv*g + be) @ W + b  ==  (c*inv) @ (diag(g) @ W) + (be @ W + b)
    w1f = g0.reshape(-1, 1) * w1
    b1f = b1 + be0 @ w1
    w2f = g1.reshape(-1, 1) * w2
    b2f = b2 + be1 @ w2

    def pad2(a, r, c):
        return jnp.pad(a, ((0, r - a.shape[0]), (0, c - a.shape[1])))

    packed = (
        pad2(w0, din_p, hid_p).astype(jnp.bfloat16),
        pad2(b0, 1, hid_p).astype(jnp.float32),
        pad2(w1f, hid_p, hid_p).astype(jnp.bfloat16),
        pad2(b1f, 1, hid_p).astype(jnp.float32),
        pad2(w2f, hid_p, out_p).astype(jnp.bfloat16),
        pad2(b2f, 1, out_p).astype(jnp.float32),
    )
    return packed, out_dim


# ---------------------------------------------------------------------------
# Fused single-shot kernel (whole padded batch resident in VMEM)
# ---------------------------------------------------------------------------
def _fused_mlp_kernel(nreal_ref, x_ref, w0_ref, b0_ref, w1_ref, b1_ref,
                      w2_ref, b2_ref, o_ref):
    n_real = nreal_ref[0]                       # SMEM scalar: real batch rows
    x = x_ref[...]                              # (Bp, Din_p) bf16
    bp = x.shape[0]
    row_ids = lax.broadcasted_iota(jnp.int32, (bp, 1), 0)
    row_mask = (row_ids < n_real).astype(jnp.float32)      # (Bp, 1)
    n_f = n_real.astype(jnp.float32)
    inv_n = 1.0 / n_f
    n_pad = (bp - n_real).astype(jnp.float32)

    def relu_bn(h):
        # ReLU then BatchNorm1d (training statistics).  gamma/beta were folded
        # into the next layer at prepack time, so only (h - mean) * inv is
        # materialized here.  Stats use XLU sublane reductions; padded rows are
        # zeroed once and their exact contribution to sum(c^2) (= n_pad*mean^2)
        # is subtracted, keeping the numerically stable two-pass variance.
        h = jnp.maximum(h, 0.0) * row_mask                  # relu + zero pad rows
        mean = jnp.sum(h, axis=0, keepdims=True) * inv_n
        c = h - mean                                        # pad rows -> -mean
        ssq = jnp.sum(c * c, axis=0, keepdims=True) - n_pad * (mean * mean)
        var = jnp.maximum(ssq * inv_n, 0.0)
        inv = lax.rsqrt(var + EPS)
        return (c * inv).astype(jnp.bfloat16)

    h = jnp.dot(x, w0_ref[...], preferred_element_type=jnp.float32) + b0_ref[...]
    h = jnp.dot(relu_bn(h), w1_ref[...],
                preferred_element_type=jnp.float32) + b1_ref[...]
    h = jnp.dot(relu_bn(h), w2_ref[...],
                preferred_element_type=jnp.float32) + b2_ref[...]
    # TODO(synk): emit bf16 here if the consumer tolerates it (halves writeback
    # bytes; matters most on v5e where the kernel is closest to HBM-bound).
    o_ref[...] = h


# ---------------------------------------------------------------------------
# Gridded two-stage path (large batches / force_tiled)
# ---------------------------------------------------------------------------
def _lin_relu_stats_kernel(nreal_ref, x_ref, w_ref, b_ref, h_ref, stats_ref):
    i = pl.program_id(0)
    tile_b = x_ref.shape[0]
    gid = i * tile_b + lax.broadcasted_iota(jnp.int32, (tile_b, 1), 0)
    mask = (gid < nreal_ref[0]).astype(jnp.float32)
    h = jnp.dot(x_ref[...], w_ref[...],
                preferred_element_type=jnp.float32) + b_ref[...]
    h = jnp.maximum(h, 0.0) * mask              # relu; zero padded rows
    h_ref[...] = h
    s = jnp.sum(h, axis=0, keepdims=True)       # per-tile partial sum
    ss = jnp.sum(h * h, axis=0, keepdims=True)  # per-tile partial sum of squares
    rid = lax.broadcasted_iota(jnp.int32, (8, 1), 0)
    stats_ref[...] = jnp.where(rid == 0, s, jnp.where(rid == 1, ss, 0.0))


def _bn_lin_relu_stats_kernel(nreal_ref, h_ref, mean_ref, inv_ref, w_ref, b_ref,
                              o_ref, stats_ref):
    i = pl.program_id(0)
    tile_b = h_ref.shape[0]
    gid = i * tile_b + lax.broadcasted_iota(jnp.int32, (tile_b, 1), 0)
    mask = (gid < nreal_ref[0]).astype(jnp.float32)
    hn = ((h_ref[...] - mean_ref[...]) * inv_ref[...]).astype(jnp.bfloat16)
    h = jnp.dot(hn, w_ref[...], preferred_element_type=jnp.float32) + b_ref[...]
    h = jnp.maximum(h, 0.0) * mask
    o_ref[...] = h
    s = jnp.sum(h, axis=0, keepdims=True)
    ss = jnp.sum(h * h, axis=0, keepdims=True)
    rid = lax.broadcasted_iota(jnp.int32, (8, 1), 0)
    stats_ref[...] = jnp.where(rid == 0, s, jnp.where(rid == 1, ss, 0.0))


def _bn_lin_kernel(h_ref, mean_ref, inv_ref, w_ref, b_ref, o_ref):
    hn = ((h_ref[...] - mean_ref[...]) * inv_ref[...]).astype(jnp.bfloat16)
    o_ref[...] = jnp.dot(hn, w_ref[...],
                         preferred_element_type=jnp.float32) + b_ref[...]


def _tiled_forward(x_p, n, packed, n_p, din_p, hid_p, out_p, vmem_limit):
    w0, b0, w1f, b1f, w2f, b2f = packed
    tile_b = min(n_p, 256)          # n_p is a power of two / multiple of 1024
    nb = n_p // tile_b
    n_arr = jnp.array([n], jnp.int32)
    cparams = pltpu.CompilerParams(dimension_semantics=("parallel",),
                                   vmem_limit_bytes=vmem_limit)

    def stats_to_mean_inv(stats):
        st = stats.reshape(nb, 8, -1)
        s = jnp.sum(st[:, 0, :], axis=0, keepdims=True)
        ss = jnp.sum(st[:, 1, :], axis=0, keepdims=True)
        mean = s / n
        var = jnp.maximum(ss / n - mean * mean, 0.0)   # single-pass variance
        return mean, lax.rsqrt(var + EPS)

    # Stage 1: Linear0 -> ReLU (+ masked partial BN stats per batch tile).
    h1, st1 = pl.pallas_call(
        _lin_relu_stats_kernel,
        out_shape=(jax.ShapeDtypeStruct((n_p, hid_p), jnp.float32),
                   jax.ShapeDtypeStruct((nb * 8, hid_p), jnp.float32)),
        grid_spec=pltpu.PrefetchScalarGridSpec(
            num_scalar_prefetch=1, grid=(nb,),
            in_specs=[pl.BlockSpec((tile_b, din_p), lambda i, nref: (i, 0)),
                      pl.BlockSpec((din_p, hid_p), lambda i, nref: (0, 0)),
                      pl.BlockSpec((1, hid_p), lambda i, nref: (0, 0))],
            out_specs=[pl.BlockSpec((tile_b, hid_p), lambda i, nref: (i, 0)),
                       pl.BlockSpec((8, hid_p), lambda i, nref: (i, 0))]),
        compiler_params=cparams,
    )(n_arr, x_p, w0, b0)
    mean1, inv1 = stats_to_mean_inv(st1)

    # Stage 2: BN0 -> Linear1 -> ReLU (+ stats).
    # TODO(synk): store h1/h2 intermediates in bf16 to halve HBM traffic on v5e.
    h2, st2 = pl.pallas_call(
        _bn_lin_relu_stats_kernel,
        out_shape=(jax.ShapeDtypeStruct((n_p, hid_p), jnp.float32),
                   jax.ShapeDtypeStruct((nb * 8, hid_p), jnp.float32)),
        grid_spec=pltpu.PrefetchScalarGridSpec(
            num_scalar_prefetch=1, grid=(nb,),
            in_specs=[pl.BlockSpec((tile_b, hid_p), lambda i, nref: (i, 0)),
                      pl.BlockSpec((1, hid_p), lambda i, nref: (0, 0)),
                      pl.BlockSpec((1, hid_p), lambda i, nref: (0, 0)),
                      pl.BlockSpec((hid_p, hid_p), lambda i, nref: (0, 0)),
                      pl.BlockSpec((1, hid_p), lambda i, nref: (0, 0))],
            out_specs=[pl.BlockSpec((tile_b, hid_p), lambda i, nref: (i, 0)),
                       pl.BlockSpec((8, hid_p), lambda i, nref: (i, 0))]),
        compiler_params=cparams,
    )(n_arr, h1, mean1, inv1, w1f, b1f)
    mean2, inv2 = stats_to_mean_inv(st2)

    # Stage 3: BN1 -> Linear2.
    out = pl.pallas_call(
        _bn_lin_kernel,
        out_shape=jax.ShapeDtypeStruct((n_p, out_p), jnp.float32),
        grid=(nb,),
        in_specs=[pl.BlockSpec((tile_b, hid_p), lambda i: (i, 0)),
                  pl.BlockSpec((1, hid_p), lambda i: (0, 0)),
                  pl.BlockSpec((1, hid_p), lambda i: (0, 0)),
                  pl.BlockSpec((hid_p, out_p), lambda i: (0, 0)),
                  pl.BlockSpec((1, out_p), lambda i: (0, 0))],
        out_specs=pl.BlockSpec((tile_b, out_p), lambda i: (i, 0)),
        compiler_params=cparams,
    )(h2, mean2, inv2, w2f, b2f)
    return out


# ---------------------------------------------------------------------------
# Public forward
# ---------------------------------------------------------------------------
@functools.partial(jax.jit, static_argnames=("out_dim", "force_tiled"))
def mlp_layer(x, packed, *, out_dim, force_tiled=False):
    """packed = prepack_params(params)[0]."""
    w0, b0, w1f, b1f, w2f, b2f = packed
    n, in_dim = x.shape
    din_p, hid_p = w0.shape
    out_p = w2f.shape[1]

    n_p = _bucket_batch(n)
    x_p = jnp.pad(x, ((0, n_p - n), (0, din_p - in_dim))).astype(jnp.bfloat16)

    f32, bf16 = 4, 2
    weight_bytes = ((din_p * hid_p + hid_p * hid_p + hid_p * out_p) * bf16
                    + (2 * hid_p + out_p) * f32)
    fused_need = (n_p * din_p * bf16 + weight_bytes + n_p * out_p * f32
                  + 4 * n_p * hid_p * f32)          # live f32 intermediates + slack
    budget = _fused_vmem_budget()

    if force_tiled or fused_need > budget:
        out_padded = _tiled_forward(x_p, n, packed, n_p, din_p, hid_p, out_p,
                                    vmem_limit=budget)
    else:
        flops = (2 * n_p * (din_p * hid_p + hid_p * hid_p + hid_p * out_p)
                 + 12 * n_p * hid_p)
        cost = pl.CostEstimate(flops=flops, transcendentals=2 * hid_p,
                               bytes_accessed=fused_need)
        smem = pl.BlockSpec(memory_space=pltpu.MemorySpace.SMEM)
        vmem = pl.BlockSpec(memory_space=pltpu.MemorySpace.VMEM)
        out_padded = pl.pallas_call(
            _fused_mlp_kernel,
            out_shape=jax.ShapeDtypeStruct((n_p, out_p), jnp.float32),
            in_specs=[smem] + [vmem] * 7,
            out_specs=vmem,
            compiler_params=pltpu.CompilerParams(vmem_limit_bytes=budget),
            cost_estimate=cost,
        )(jnp.array([n], jnp.int32), x_p, w0, b0, w1f, b1f, w2f, b2f)

    return out_padded[:n, :out_dim]


# ---------------------------------------------------------------------------
# Test harness
# ---------------------------------------------------------------------------
def init_params(key, num_layers, in_dim, out_dim, hid_dim):
    dims = [in_dim] + [hid_dim] * (num_layers - 1) + [out_dim]
    keys = jax.random.split(key, 4 * num_layers)
    ws, bs, gs, bes = [], [], [], []
    for i, (d_in, d_out) in enumerate(zip(dims[:-1], dims[1:])):
        bound = 1.0 / float(d_in) ** 0.5
        # weight stored (in, out) = transpose of torch's (out, in)
        ws.append(jax.random.uniform(keys[4 * i + 0], (d_in, d_out),
                                     jnp.float32, -bound, bound))
        bs.append(jax.random.uniform(keys[4 * i + 1], (1, d_out),
                                     jnp.float32, -bound, bound))
    for i in range(num_layers - 1):
        # Non-default (random) affine params so the gamma/beta folding is exercised.
        gs.append(jax.random.uniform(keys[4 * i + 2], (1, hid_dim),
                                     jnp.float32, 0.5, 1.5))
        bes.append(jax.random.uniform(keys[4 * i + 3], (1, hid_dim),
                                      jnp.float32, -0.5, 0.5))
    return (ws[0], bs[0], gs[0], bes[0], ws[1], bs[1],
            gs[1], bes[1], ws[2], bs[2])


def reference_f32(x, params):
    """Pure-f32 PyTorch-equivalent forward (true module semantics)."""
    w0, b0, g0, be0, w1, b1, g1, be1, w2, b2 = params

    def bn(h, g, be):
        mean = jnp.mean(h, axis=0, keepdims=True)
        var = jnp.mean((h - mean) ** 2, axis=0, keepdims=True)
        return (h - mean) * lax.rsqrt(var + EPS) * g + be

    h = x @ w0 + b0
    h = bn(jnp.maximum(h, 0.0), g0, be0) @ w1 + b1
    h = bn(jnp.maximum(h, 0.0), g1, be1) @ w2 + b2
    return h


if __name__ == "__main__":
    num_layers, in_dim, hid_dim, out_dim = 3, 32, 32, 16
    key = jax.random.PRNGKey(0)
    kx1, kx2, kp = jax.random.split(key, 3)

    params = init_params(kp, num_layers, in_dim, out_dim, hid_dim)
    packed, odim = prepack_params(params)

    # Fused single-shot path (batch not a multiple of 8 -> exercises row masking).
    x_small = jax.random.normal(kx1, (100, in_dim), jnp.float32)
    out_fused = jax.block_until_ready(mlp_layer(x_small, packed, out_dim=odim))
    ref_small = reference_f32(x_small, params)
    assert out_fused.shape == (100, out_dim)
    assert jnp.allclose(out_fused, ref_small, atol=5e-2, rtol=5e-2), \
        float(jnp.max(jnp.abs(out_fused - ref_small)))

    # Gridded two-stage path (forced): multi-tile batch grid with masked tail rows.
    x_big = jax.random.normal(kx2, (300, in_dim), jnp.float32)
    out_tiled = jax.block_until_ready(
        mlp_layer(x_big, packed, out_dim=odim, force_tiled=True))
    ref_big = reference_f32(x_big, params)
    assert out_tiled.shape == (300, out_dim)
    assert jnp.allclose(out_tiled, ref_big, atol=5e-2, rtol=5e-2), \
        float(jnp.max(jnp.abs(out_tiled - ref_big)))

    print("KERNEL_OK")
</pallas_src>

<mosaic_0001>
module attributes {stable_mosaic.version = 11 : i64} {
  func.func @_fused_mlp_kernel(%arg0: memref<1xi32, #tpu.memory_space<smem>>, %arg1: memref<128x128xbf16, #tpu.memory_space<vmem>>, %arg2: memref<128x128xbf16, #tpu.memory_space<vmem>>, %arg3: memref<1x128xf32, #tpu.memory_space<vmem>>, %arg4: memref<128x128xbf16, #tpu.memory_space<vmem>>, %arg5: memref<1x128xf32, #tpu.memory_space<vmem>>, %arg6: memref<128x128xbf16, #tpu.memory_space<vmem>>, %arg7: memref<1x128xf32, #tpu.memory_space<vmem>>, %arg8: memref<128x128xf32, #tpu.memory_space<vmem>>) attributes {dimension_semantics = [], scalar_prefetch = 0 : i64, scratch_operands = 0 : i64, tpu.core_type = #tpu.core_type<tc>} {
    %c0 = arith.constant 0 : index
    %0 = memref.load %arg0[%c0] : memref<1xi32, #tpu.memory_space<smem>>
    %c0_0 = arith.constant 0 : index
    %c0_1 = arith.constant 0 : index
    %1 = vector.load %arg1[%c0_0, %c0_1] : memref<128x128xbf16, #tpu.memory_space<vmem>>, vector<128x128xbf16>
    %2 = tpu.iota {dimensions = array<i32: 0>} : vector<128x1xi32>
    %3 = vector.broadcast %0 : i32 to vector<128x1xi32>
    %4 = arith.cmpi slt, %2, %3 : vector<128x1xi32>
    %5 = arith.extui %4 : vector<128x1xi1> to vector<128x1xi32>
    %6 = arith.sitofp %5 : vector<128x1xi32> to vector<128x1xf32>
    %7 = arith.sitofp %0 : i32 to f32
    %cst = arith.constant 1.000000e+00 : f32
    %8 = arith.divf %cst, %7 : f32
    %c128_i32 = arith.constant 128 : i32
    %9 = arith.subi %c128_i32, %0 : i32
    %10 = arith.sitofp %9 : i32 to f32
    %c0_2 = arith.constant 0 : index
    %c0_3 = arith.constant 0 : index
    %11 = vector.load %arg2[%c0_2, %c0_3] : memref<128x128xbf16, #tpu.memory_space<vmem>>, vector<128x128xbf16>
    %cst_4 = arith.constant dense<0.000000e+00> : vector<128x128xf32>
    %12 = tpu.matmul %1, %11, %cst_4 {dimension_numbers = #tpu.dot_dimension_numbers<[1], [0], [0], [1], [0, 0, 1, 1], [], []>} : vector<128x128xbf16>, vector<128x128xbf16>, vector<128x128xf32> -> vector<128x128xf32>
    %c0_5 = arith.constant 0 : index
    %c0_6 = arith.constant 0 : index
    %13 = vector.load %arg3[%c0_5, %c0_6] : memref<1x128xf32, #tpu.memory_space<vmem>>, vector<1x128xf32>
    %14 = vector.broadcast %13 : vector<1x128xf32> to vector<128x128xf32>
    %15 = arith.addf %12, %14 : vector<128x128xf32>
    %cst_7 = arith.constant 0.000000e+00 : f32
    %16 = vector.broadcast %cst_7 : f32 to vector<128x128xf32>
    %17 = arith.maximumf %15, %16 : vector<128x128xf32>
    %18 = vector.broadcast %6 : vector<128x1xf32> to vector<128x128xf32>
    %19 = arith.mulf %17, %18 : vector<128x128xf32>
    %cst_8 = arith.constant dense<0.000000e+00> : vector<128xf32>
    %20 = vector.multi_reduction <add>, %19, %cst_8 [0] : vector<128x128xf32> to vector<128xf32>
    %21 = vector.shape_cast %20 : vector<128xf32> to vector<1x128xf32>
    %22 = vector.broadcast %8 : f32 to vector<1x128xf32>
    %23 = arith.mulf %21, %22 : vector<1x128xf32>
    %24 = vector.broadcast %23 : vector<1x128xf32> to vector<128x128xf32>
    %25 = arith.subf %19, %24 : vector<128x128xf32>
    %26 = arith.mulf %25, %25 : vector<128x128xf32>
    %cst_9 = arith.constant dense<0.000000e+00> : vector<128xf32>
    %27 = vector.multi_reduction <add>, %26, %cst_9 [0] : vector<128x128xf32> to vector<128xf32>
    %28 = vector.shape_cast %27 : vector<128xf32> to vector<1x128xf32>
    %29 = arith.mulf %23, %23 : vector<1x128xf32>
    %30 = vector.broadcast %10 : f32 to vector<1x128xf32>
    %31 = arith.mulf %30, %29 : vector<1x128xf32>
    %32 = arith.subf %28, %31 : vector<1x128xf32>
    %33 = vector.broadcast %8 : f32 to vector<1x128xf32>
    %34 = arith.mulf %32, %33 : vector<1x128xf32>
    %cst_10 = arith.constant 0.000000e+00 : f32
    %35 = vector.broadcast %cst_10 : f32 to vector<1x128xf32>
    %36 = arith.maximumf %34, %35 : vector<1x128xf32>
    %cst_11 = arith.constant 9.99999974E-6 : f32
    %37 = vector.broadcast %cst_11 : f32 to vector<1x128xf32>
    %38 = arith.addf %36, %37 : vector<1x128xf32>
    %39 = math.rsqrt %38 : vector<1x128xf32>
    %40 = vector.broadcast %39 : vector<1x128xf32> to vector<128x128xf32>
    %41 = arith.mulf %25, %40 : vector<128x128xf32>
    %42 = arith.truncf %41 : vector<128x128xf32> to vector<128x128xbf16>
    %c0_12 = arith.constant 0 : index
    %c0_13 = arith.constant 0 : index
    %43 = vector.load %arg4[%c0_12, %c0_13] : memref<128x128xbf16, #tpu.memory_space<vmem>>, vector<128x128xbf16>
    %cst_14 = arith.constant dense<0.000000e+00> : vector<128x128xf32>
    %44 = tpu.matmul %42, %43, %cst_14 {dimension_numbers = #tpu.dot_dimension_numbers<[1], [0], [0], [1], [0, 0, 1, 1], [], []>} : vector<128x128xbf16>, vector<128x128xbf16>, vector<128x128xf32> -> vector<128x128xf32>
    %c0_15 = arith.constant 0 : index
    %c0_16 = arith.constant 0 : index
    %45 = vector.load %arg5[%c0_15, %c0_16] : memref<1x128xf32, #tpu.memory_space<vmem>>, vector<1x128xf32>
    %46 = vector.broadcast %45 : vector<1x128xf32> to vector<128x128xf32>
    %47 = arith.addf %44, %46 : vector<128x128xf32>
    %cst_17 = arith.constant 0.000000e+00 : f32
    %48 = vector.broadcast %cst_17 : f32 to vector<128x128xf32>
    %49 = arith.maximumf %47, %48 : vector<128x128xf32>
    %50 = vector.broadcast %6 : vector<128x1xf32> to vector<128x128xf32>
    %51 = arith.mulf %49, %50 : vector<128x128xf32>
    %cst_18 = arith.constant dense<0.000000e+00> : vector<128xf32>
    %52 = vector.multi_reduction <add>, %51, %cst_18 [0] : vector<128x128xf32> to vector<128xf32>
    %53 = vector.shape_cast %52 : vector<128xf32> to vector<1x128xf32>
    %54 = vector.broadcast %8 : f32 to vector<1x128xf32>
    %55 = arith.mulf %53, %54 : vector<1x128xf32>
    %56 = vector.broadcast %55 : vector<1x128xf32> to vector<128x128xf32>
    %57 = arith.subf %51, %56 : vector<128x128xf32>
    %58 = arith.mulf %57, %57 : vector<128x128xf32>
    %cst_19 = arith.constant dense<0.000000e+00> : vector<128xf32>
    %59 = vector.multi_reduction <add>, %58, %cst_19 [0] : vector<128x128xf32> to vector<128xf32>
    %60 = vector.shape_cast %59 : vector<128xf32> to vector<1x128xf32>
    %61 = arith.mulf %55, %55 : vector<1x128xf32>
    %62 = vector.broadcast %10 : f32 to vector<1x128xf32>
    %63 = arith.mulf %62, %61 : vector<1x128xf32>
    %64 = arith.subf %60, %63 : vector<1x128xf32>
    %65 = vector.broadcast %8 : f32 to vector<1x128xf32>
    %66 = arith.mulf %64, %65 : vector<1x128xf32>
    %cst_20 = arith.constant 0.000000e+00 : f32
    %67 = vector.broadcast %cst_20 : f32 to vector<1x128xf32>
    %68 = arith.maximumf %66, %67 : vector<1x128xf32>
    %cst_21 = arith.constant 9.99999974E-6 : f32
    %69 = vector.broadcast %cst_21 : f32 to vector<1x128xf32>
    %70 = arith.addf %68, %69 : vector<1x128xf32>
    %71 = math.rsqrt %70 : vector<1x128xf32>
    %72 = vector.broadcast %71 : vector<1x128xf32> to vector<128x128xf32>
    %73 = arith.mulf %57, %72 : vector<128x128xf32>
    %74 = arith.truncf %73 : vector<128x128xf32> to vector<128x128xbf16>
    %c0_22 = arith.constant 0 : index
    %c0_23 = arith.constant 0 : index
    %75 = vector.load %arg6[%c0_22, %c0_23] : memref<128x128xbf16, #tpu.memory_space<vmem>>, vector<128x128xbf16>
    %cst_24 = arith.constant dense<0.000000e+00> : vector<128x128xf32>
    %76 = tpu.matmul %74, %75, %cst_24 {dimension_numbers = #tpu.dot_dimension_numbers<[1], [0], [0], [1], [0, 0, 1, 1], [], []>} : vector<128x128xbf16>, vector<128x128xbf16>, vector<128x128xf32> -> vector<128x128xf32>
    %c0_25 = arith.constant 0 : index
    %c0_26 = arith.constant 0 : index
    %77 = vector.load %arg7[%c0_25, %c0_26] : memref<1x128xf32, #tpu.memory_space<vmem>>, vector<1x128xf32>
    %78 = vector.broadcast %77 : vector<1x128xf32> to vector<128x128xf32>
    %79 = arith.addf %76, %78 : vector<128x128xf32>
    %c0_27 = arith.constant 0 : index
    %c0_28 = arith.constant 0 : index
    %80 = vector.load %arg8[%c0_27, %c0_28] : memref<128x128xf32, #tpu.memory_space<vmem>>, vector<128x128xf32>
    tpu.vector_store %arg8[%c0_27, %c0_28], %79 {strides = array<i32>} : memref<128x128xf32, #tpu.memory_space<vmem>>, vector<128x128xf32>,
    return
  }
}

</mosaic_0001>

<bundles_post_ra>
// kernel: mlp_layer.1
= control target key start
LH: loop header
LB: loop body
LE: loop exit
PB: predicated region body
PF: predicated region fallthrough
CT: control target
= control target key end

     0   :  { %v47_v34 = vlaneseq  ;;  %v1059_v50 = vmov 0.0   ;;  %s1675_s2 = inlined_call_operand.vmem [shape: bf16[128,128], index: 2, kind: input, shape index: {}]   ;;  %s1676_s3 = inlined_call_operand.vmem [shape: f32[1,128], index: 3, kind: input, shape index: {}]   ;;  %s1677_s1 = inlined_call_operand.vmem [shape: bf16[128,128], index: 1, kind: input, shape index: {}]   ;;  %s1678_s0 = inlined_call_operand.<no memory space> [shape: s32[1], index: 0, kind: input, shape index: {}]   ;;  %s1679_s4 = inlined_call_operand.vmem [shape: bf16[128,128], index: 4, kind: input, shape index: {}]   ;;  %s1680_s5 = inlined_call_operand.vmem [shape: f32[1,128], index: 5, kind: input, shape index: {}]   ;;  %s1681_s6 = inlined_call_operand.vmem [shape: bf16[128,128], index: 6, kind: input, shape index: {}]   ;;  %s1682_s7 = inlined_call_operand.vmem [shape: f32[1,128], index: 7, kind: input, shape index: {}]   ;;  %s1683_s8 = inlined_call_operand.vmem [shape: f32[128,128], index: 8, kind: output, shape index: {}]  }
   0x1   :  { %v1006_v0 = vld [vmem:[%s1675_s2 + $0x38] sm:$0xff]  ;;  %v1005_v1 = vld [vmem:[%s1675_s2 + $0x30] sm:$0xff]  ;;  %v1004_v2 = vld [vmem:[%s1675_s2 + $0x28] sm:$0xff]  ;;  %s113_s16 = scvt.s32.f32 %s1678_s0  ;;  %v1169_v40 = vstv %s1678_s0  ;;  %s130_s9 = ssub.s32 128, %s1678_s0 }
   0x2   :  { %248 = vmatpush.bf16.msra.mxu0 %v1006_v0  ;;  %1023 = vmatpush.bf16.msra.mxu3 %v1006_v0  ;;  %v1003_v3 = vld [vmem:[%s1675_s2 + $0x20] sm:$0xff]  ;;  %v1002_v4 = vld [vmem:[%s1675_s2 + $0x18] sm:$0xff]  ;;  %v1001_v5 = vld [vmem:[%s1675_s2 + $0x10] sm:$0xff]  ;;  %v1156_v36 = vshrl.u32 %v47_v34, 7  ;;  %s1425_s12 = scvt.s32.f32 %s130_s9 }
   0x3   :  { %v1000_v6 = vld [vmem:[%s1675_s2 + $0x8] sm:$0xff]  ;;  %v999_v7 = vld [vmem:[%s1675_s2] sm:$0xff]  ;;  %v997_v10 = vld [vmem:[%s1677_s1 + $0x30] sm:$0xff]  ;;  %v114_v19 = vstv %s113_s16 }
   0x4   :  { %v991_v8 = vld [vmem:[%s1677_s1] sm:$0xff]  ;;  %v992_v9 = vld [vmem:[%s1677_s1 + $0x8] sm:$0xff]  ;;  %v993_v11 = vld [vmem:[%s1677_s1 + $0x10] sm:$0xff]  ;;  %1053 = vrcp.f32 %v114_v19  ;;  %v126_v25 = vand.u32 2147483648, %v114_v19  ;;  %vm120_vm0 = vweird.f32 %v114_v19  ;;  %v124_v27 = vand.u32 2147483647, %v114_v19 }
   0x5   :  { %v998_v12 = vld [vmem:[%s1677_s1 + $0x38] sm:$0xff]  ;;  %v995_v14 = vld [vmem:[%s1677_s1 + $0x20] sm:$0xff]  ;;  %v996_v15 = vld [vmem:[%s1677_s1 + $0x28] sm:$0xff]  ;;  %v49_v38 = vadd.s32 8, %v1156_v36  ;;  %v50_v42 = vadd.s32 16, %v1156_v36  ;;  %v51_v43 = vadd.s32 24, %v1156_v36  ;;  %vm65_vm5 = vcmp.lt.s32.totalorder %v1156_v36, %v1169_v40 }
   0x6   :  { %249 = vmatpush.bf16.msra.mxu0 %v1005_v1  ;;  %1024 = vmatpush.bf16.msra.mxu3 %v1005_v1  ;;  %v994_v13 = vld [vmem:[%s1677_s1 + $0x18] sm:$0xff]  ;;  %v127_v28 = vor.u32 1.1754944e-38, %v126_v25  ;;  %vm125_vm3 = vcmp.eq.f32.partialorder %v124_v27, 8.507059e+37  ;;  %v1161_v37 = vld [vmem:[%s1676_s3] ss:$0 sm:$0xff]  ;;  %v52_v49 = vadd.s32 32, %v1156_v36 }
   0x7   :  { %vm66_vm4 = vcmp.lt.s32.totalorder %v49_v38, %v1169_v40  ;;  %vm67_vm6 = vcmp.lt.s32.totalorder %v50_v42, %v1169_v40  ;;  %vm68_vm7 = vcmp.lt.s32.totalorder %v51_v43, %v1169_v40  ;;  %v53_v55 = vadd.s32 40, %v1156_v36 }
   0x8   :  { %v1183_v51 = vsel %vm66_vm4, 1.0, %v1059_v50  ;;  %v1189_v56 = vsel %vm65_vm5, 1.0, %v1059_v50  ;;  %v1192_v57 = vsel %vm67_vm6, 1.0, %v1059_v50  ;;  %vm69_vm8 = vcmp.lt.s32.totalorder %v52_v49, %v1169_v40 }
   0x9   :  { %v1200_v62 = vsel %vm68_vm7, 1.0, %v1059_v50  ;;  %v54_v63 = vadd.s32 48, %v1156_v36  ;;  %vm70_vm9 = vcmp.lt.s32.totalorder %v53_v55, %v1169_v40  ;;  %v60_v38 = vadd.s32 96, %v1156_v36 }
   0xa   :  { %250 = vmatpush.bf16.msra.mxu0 %v1004_v2  ;;  %1025 = vmatpush.bf16.msra.mxu3 %v1004_v2  ;;  %v1054_v20 = vpop.eup %1053  ;;  %v62_v55 = vadd.s32 112, %v1156_v36 }
   0xb   :  { %v116_v22 = vmul.f32 %v1054_v20, %v114_v19  ;;  %vm121_vm1 = vweird.f32 %v1054_v20  ;;  %vm71_vm10 = vcmp.lt.s32.totalorder %v54_v63, %v1169_v40 }
   0xc   :  { %vm122_vm2 = vmor %vm120_vm0, %vm121_vm1  ;;  %vm77_vm0 = vcmp.lt.s32.totalorder %v60_v38, %v1169_v40 }
   0xd   :  { %v117_v23 = vsub.f32 1.0, %v116_v22 }
   0xe   :  { %251 = vmatpush.bf16.msra.mxu0 %v1003_v3  ;;  %1026 = vmatpush.bf16.msra.mxu3 %v1003_v3 }
   0xf   :  { %v118_v24 = vmul.f32 %v1054_v20, %v117_v23  ;;  %v58_v23 = vadd.s32 80, %v1156_v36 }
  0x11   :  { %v119_v26 = vadd.f32 %v1054_v20, %v118_v24  ;;  %vm75_vm14 = vcmp.lt.s32.totalorder %v58_v23, %v1169_v40 }
  0x12   :  { %252 = vmatpush.bf16.msra.mxu0 %v1002_v4  ;;  %1027 = vmatpush.bf16.msra.mxu3 %v1002_v4  ;;  %v1211_v4 = vsel %vm69_vm8, 1.0, %v1059_v50 }
  0x13   :  { %v123_v30 = vsel %vm122_vm2, %v1054_v20, %v119_v26  ;;  %v1238_v20 = vsel %vm71_vm10, 1.0, %v1059_v50  ;;  %vm79_vm2 = vcmp.lt.s32.totalorder %v62_v55, %v1169_v40 }
  0x14   :  { %v128_v31 = vsel %vm125_vm3, %v127_v28, %v123_v30 }
  0x15   :  { %1047 = vpush %v128_v31 }
  0x16   :  { %253 = vmatpush.bf16.msra.mxu0 %v1001_v5  ;;  %1028 = vmatpush.bf16.msra.mxu3 %v1001_v5 }
  0x1a   :  { %254 = vmatpush.bf16.msra.mxu0 %v1000_v6  ;;  %1029 = vmatpush.bf16.msra.mxu3 %v1000_v6  ;;  %v55_v6 = vadd.s32 56, %v1156_v36 }
  0x1c   :  { %vm72_vm11 = vcmp.lt.s32.totalorder %v55_v6, %v1169_v40  ;;  %v63_v6 = vadd.s32 120, %v1156_v36 }
  0x1d   :  { %v1245_v25 = vsel %vm72_vm11, 1.0, %v1059_v50 }
  0x1e   :  { %255 = vmatpush.bf16.msra.mxu0 %v999_v7  ;;  %1030 = vmatpush.bf16.msra.mxu3 %v999_v7  ;;  %vm80_vm3 = vcmp.lt.s32.totalorder %v63_v6, %v1169_v40 }
  0x21   :  { %256 = vmatmul.bf16.vlgmr.msra.gmra.mxu0 %v991_v8  ;;  %286 = vmatmul.bf16.vlgmr.msra.gmra.mxu3 %v997_v10  ;;  %v1221_v10 = vsel %vm70_vm9, 1.0, %v1059_v50 }
  0x31   :  { %261 = vmatmul.bf16.gmra.mxu0 %v992_v9  ;;  %291 = vmatmul.bf16.gmra.mxu3 %v998_v12  ;;  %v56_v12 = vadd.s32 64, %v1156_v36 }
  0x33   :  { %vm73_vm12 = vcmp.lt.s32.totalorder %v56_v12, %v1169_v40 }
  0x41   :  { %266 = vmatmul.bf16.gmra.mxu0 %v993_v11 }
  0x46   :  { %s1048_s3 = spop %1047 }
  0x51   :  { %271 = vmatmul.bf16.gmra.mxu0 %v994_v13 }
  0x61   :  { %276 = vmatmul.bf16.gmra.mxu0 %v995_v14 }
  0x71   :  { %281 = vmatmul.bf16.gmra.mxu0 %v996_v15 }
  0x9e   :  { %v257_v16 = vpop.f32.mrf.mxu0 }
  0x9f   :  { %v258_v44 = vadd.f32 %v1161_v37, %v257_v16 }
  0xa1   :  { %v297_v52 = vmax.f32 %v258_v44, 0.0 }
  0xa3   :  { %v1204_v0 = vmul.f32 %v1189_v56, %v297_v52 }
  0xa4   :  { %v1164_v39 = vpop.f32.mrf.mxu3 }
  0xa6   :  { %v259_v17 = vpop.f32.mrf.mxu0 }
  0xa7   :  { %v260_v41 = vadd.f32 %v1161_v37, %v259_v17  ;;  %v57_v17 = vadd.s32 72, %v1156_v36 }
  0xa9   :  { %v298_v47 = vmax.f32 %v260_v41, 0.0  ;;  %vm74_vm13 = vcmp.lt.s32.totalorder %v57_v17, %v1169_v40 }
  0xaa   :  { %v1263_v41 = vsel %vm74_vm13, 1.0, %v1059_v50 }
  0xab   :  { %v1195_v58 = vmul.f32 %v1183_v51, %v298_v47  ;;  %v1273_v47 = vsel %vm75_vm14, 1.0, %v1059_v50 }
  0xac   :  { %v289_v61 = vpop.f32.mrf.mxu3 }
  0xad   :  { %v329_v7 = vadd.f32 %v1195_v58, %v1204_v0  ;;  %v290_v52 = vadd.f32 %v1161_v37, %v289_v61 }
  0xae   :  { %v262_v18 = vpop.f32.mrf.mxu0 }
  0xaf   :  { %v263_v45 = vadd.f32 %v1161_v37, %v262_v18 }
  0xb1   :  { %v299_v53 = vmax.f32 %v263_v45, 0.0  ;;  %v288_v45 = vadd.f32 %v1161_v37, %v1164_v39 }
  0xb3   :  { %v1207_v1 = vmul.f32 %v1192_v57, %v299_v53 }
  0xb4   :  { %v292_v27 = vpop.f32.mrf.mxu3 }
  0xb5   :  { %v330_v13 = vadd.f32 %v329_v7, %v1207_v1  ;;  %v293_v61 = vadd.f32 %v1161_v37, %v292_v27  ;;  %v1296_v7 = vsel %vm77_vm0, 1.0, %v1059_v50 }
  0xb6   :  { %v264_v21 = vpop.f32.mrf.mxu0 }
  0xb7   :  { %v265_v48 = vadd.f32 %v1161_v37, %v264_v21  ;;  %v311_v17 = vmax.f32 %v293_v61, 0.0 }
  0xb9   :  { %v300_v59 = vmax.f32 %v265_v48, 0.0 }
  0xbb   :  { %v1218_v8 = vmul.f32 %v1200_v62, %v300_v59 }
  0xbd   :  { %v331_v18 = vadd.f32 %v330_v13, %v1218_v8 }
  0xbe   :  { %v267_v29 = vpop.f32.mrf.mxu0 }
  0xbf   :  { %v268_v54 = vadd.f32 %v1161_v37, %v267_v29 }
  0xc1   :  { %v301_v2 = vmax.f32 %v268_v54, 0.0 }
  0xc3   :  { %v1228_v14 = vmul.f32 %v1211_v4, %v301_v2  ;;  %v294_v2 = vpop.f32.mrf.mxu3 }
  0xc4   :  { %v295_v13 = vadd.f32 %v1161_v37, %v294_v2 }
  0xc5   :  { %v332_v24 = vadd.f32 %v331_v18, %v1228_v14 }
  0xc6   :  { %v269_v32 = vpop.f32.mrf.mxu0  ;;  %v312_v23 = vmax.f32 %v295_v13, 0.0  ;;  %v1014_v13 = vld [vmem:[%s1679_s4 + $0x38] sm:$0xff] }
  0xc7   :  { %v270_v60 = vadd.f32 %v1161_v37, %v269_v32  ;;  %v1254_v32 = vsel %vm73_vm12, 1.0, %v1059_v50  ;;  %514 = vmatpush.bf16.msra.mxu1 %v1014_v13  ;;  %1031 = vmatpush.bf16.msrb.mxu3 %v1014_v13  ;;  %v1007_v13 = vld [vmem:[%s1679_s4] sm:$0xff] }
  0xc9   :  { %v302_v9 = vmax.f32 %v270_v60, 0.0  ;;  %v309_v60 = vmax.f32 %v288_v45, 0.0 }
  0xcb   :  { %v1235_v19 = vmul.f32 %v1221_v10, %v302_v9  ;;  %v310_v9 = vmax.f32 %v290_v52, 0.0 }
  0xcd   :  { %v333_v31 = vadd.f32 %v332_v24, %v1235_v19  ;;  %v1312_v24 = vsel %vm80_vm3, 1.0, %v1059_v50 }
  0xce   :  { %v272_v33 = vpop.f32.mrf.mxu0  ;;  %v328_v27 = vmul.f32 %v1312_v24, %v312_v23 }
  0xcf   :  { %v273_v5 = vadd.f32 %v1161_v37, %v272_v33 }
  0xd1   :  { %v303_v15 = vmax.f32 %v273_v5, 0.0 }
  0xd3   :  { %v1248_v28 = vmul.f32 %v1238_v20, %v303_v15 }
  0xd5   :  { %v334_v42 = vadd.f32 %v333_v31, %v1248_v28 }
  0xd6   :  { %v274_v35 = vpop.f32.mrf.mxu0 }
  0xd7   :  { %v275_v11 = vadd.f32 %v1161_v37, %v274_v35  ;;  %v59_v35 = vadd.s32 88, %v1156_v36 }
  0xd9   :  { %v304_v21 = vmax.f32 %v275_v11, 0.0  ;;  %vm76_vm15 = vcmp.lt.s32.totalorder %v59_v35, %v1169_v40 }
  0xda   :  { %v1290_v63 = vsel %vm76_vm15, 1.0, %v1059_v50 }
  0xdb   :  { %v1257_v33 = vmul.f32 %v1245_v25, %v304_v21 }
  0xdd   :  { %v335_v48 = vadd.f32 %v334_v42, %v1257_v33  ;;  %v1316_v42 = vstv %s1048_s3 }
  0xde   :  { %v277_v46 = vpop.f32.mrf.mxu0 }
  0xdf   :  { %v278_v16 = vadd.f32 %v1161_v37, %v277_v46  ;;  %v61_v46 = vadd.s32 104, %v1156_v36  ;;  %v1308_v36 = vsel %vm79_vm2, 1.0, %v1059_v50 }
  0xe1   :  { %v305_v29 = vmax.f32 %v278_v16, 0.0  ;;  %vm78_vm1 = vcmp.lt.s32.totalorder %v61_v46, %v1169_v40  ;;  %v325_v16 = vmul.f32 %v1296_v7, %v309_v60 }
  0xe2   :  { %v1303_v15 = vsel %vm78_vm1, 1.0, %v1059_v50 }
  0xe3   :  { %v1267_v43 = vmul.f32 %v1254_v32, %v305_v29  ;;  %v326_v21 = vmul.f32 %v1303_v15, %v310_v9 }
  0xe5   :  { %v336_v54 = vadd.f32 %v335_v48, %v1267_v43 }
  0xe6   :  { %v279_v3 = vpop.f32.mrf.mxu0 }
  0xe7   :  { %v280_v22 = vadd.f32 %v1161_v37, %v279_v3 }
  0xe9   :  { %v306_v34 = vmax.f32 %v280_v22, 0.0 }
  0xeb   :  { %v1277_v49 = vmul.f32 %v1263_v41, %v306_v34 }
  0xed   :  { %v337_v3 = vadd.f32 %v336_v54, %v1277_v49 }
  0xee   :  { %v282_v26 = vpop.f32.mrf.mxu0 }
  0xef   :  { %v283_v30 = vadd.f32 %v1161_v37, %v282_v26 }
  0xf1   :  { %v307_v44 = vmax.f32 %v283_v30, 0.0 }
  0xf3   :  { %v1284_v39 = vmul.f32 %v1273_v47, %v307_v44 }
  0xf5   :  { %v338_v11 = vadd.f32 %v337_v3, %v1284_v39 }
  0xf6   :  { %v284_v53 = vpop.f32.mrf.mxu0 }
  0xf7   :  { %v285_v59 = vadd.f32 %v1161_v37, %v284_v53  ;;  %v327_v37 = vmul.f32 %v1308_v36, %v311_v17 }
  0xf9   :  { %v308_v5 = vmax.f32 %v285_v59, 0.0 }
  0xfb   :  { %v324_v12 = vmul.f32 %v1290_v63, %v308_v5 }
  0xfd   :  { %v339_v18 = vadd.f32 %v338_v11, %v324_v12 }
  0xff   :  { %v340_v22 = vadd.f32 %v339_v18, %v325_v16 }
 0x101   :  { %v341_v26 = vadd.f32 %v340_v22, %v326_v21 }
 0x103   :  { %v342_v29 = vadd.f32 %v341_v26, %v327_v37  ;;  %v1013_v26 = vld [vmem:[%s1679_s4 + $0x30] sm:$0xff] }
 0x104   :  { %515 = vmatpush.bf16.msra.mxu1 %v1013_v26  ;;  %1032 = vmatpush.bf16.msrb.mxu3 %v1013_v26 }
 0x105   :  { %v343_v30 = vadd.f32 %v342_v29, %v328_v27 }
 0x107   :  { %v344_v31 = vrot.slane %v343_v30, 4 }
 0x109   :  { %v345_v34 = vadd.f32 %v344_v31, %v343_v30 }
 0x10b   :  { %v346_v40 = vrot.slane %v345_v34, 2 }
 0x10d   :  { %v347_v35 = vadd.f32 %v346_v40, %v345_v34  ;;  %v1012_v40 = vld [vmem:[%s1679_s4 + $0x28] sm:$0xff] }
 0x10e   :  { %516 = vmatpush.bf16.msra.mxu1 %v1012_v40  ;;  %1033 = vmatpush.bf16.msrb.mxu3 %v1012_v40 }
 0x10f   :  { %v348_v38 = vrot.slane %v347_v35, 1 }
 0x111   :  { %v349_v44 = vadd.f32 %v348_v38, %v347_v35 }
 0x113   :  { %v1319_v45 = vmul.f32 %v1316_v42, %v349_v44 }
 0x115   :  { %v1323_v50 = vsub.f32 %v1204_v0, %v1319_v45  ;;  %v1327_v46 = vsub.f32 %v1195_v58, %v1319_v45  ;;  %v1331_v48 = vsub.f32 %v1207_v1, %v1319_v45  ;;  %v1339_v54 = vsub.f32 %v1218_v8, %v1319_v45 }
 0x116   :  { %v1343_v0 = vsub.f32 %v1228_v14, %v1319_v45  ;;  %v1349_v1 = vsub.f32 %v1235_v19, %v1319_v45  ;;  %v1355_v8 = vsub.f32 %v1248_v28, %v1319_v45  ;;  %v1361_v3 = vsub.f32 %v1257_v33, %v1319_v45 }
 0x117   :  { %v368_v52 = vmul.f32 %v1323_v50, %v1323_v50  ;;  %v369_v53 = vmul.f32 %v1327_v46, %v1327_v46  ;;  %v370_v58 = vmul.f32 %v1331_v48, %v1331_v48  ;;  %v371_v59 = vmul.f32 %v1339_v54, %v1339_v54 }
 0x118   :  { %v372_v14 = vmul.f32 %v1343_v0, %v1343_v0  ;;  %v373_v19 = vmul.f32 %v1349_v1, %v1349_v1  ;;  %v1367_v5 = vsub.f32 %v1267_v43, %v1319_v45  ;;  %v374_v28 = vmul.f32 %v1355_v8, %v1355_v8 }
 0x119   :  { %v384_v55 = vadd.f32 %v369_v53, %v368_v52  ;;  %v1373_v9 = vsub.f32 %v1277_v49, %v1319_v45  ;;  %v375_v33 = vmul.f32 %v1361_v3, %v1361_v3  ;;  %v1382_v43 = vsub.f32 %v1284_v39, %v1319_v45  ;;  %v1011_v53 = vld [vmem:[%s1679_s4 + $0x20] sm:$0xff] }
 0x11a   :  { %v376_v17 = vmul.f32 %v1367_v5, %v1367_v5  ;;  %v1387_v49 = vsub.f32 %v324_v12, %v1319_v45  ;;  %v1395_v39 = vsub.f32 %v325_v16, %v1319_v45  ;;  %v365_v12 = vsub.f32 %v326_v21, %v1319_v45  ;;  %517 = vmatpush.bf16.msra.mxu1 %v1011_v53 }
 0x11b   :  { %v385_v60 = vadd.f32 %v384_v55, %v370_v58  ;;  %v377_v22 = vmul.f32 %v1373_v9, %v1373_v9  ;;  %v378_v29 = vmul.f32 %v1382_v43, %v1382_v43  ;;  %v1406_v35 = vsub.f32 %v327_v37, %v1319_v45  ;;  %1034 = vmatpush.bf16.msrb.mxu3 %v1011_v53 }
 0x11c   :  { %v379_v31 = vmul.f32 %v1387_v49, %v1387_v49  ;;  %v380_v16 = vmul.f32 %v1395_v39, %v1395_v39  ;;  %v367_v44 = vsub.f32 %v328_v27, %v1319_v45  ;;  %v381_v21 = vmul.f32 %v365_v12, %v365_v12 }
 0x11d   :  { %v386_v2 = vadd.f32 %v385_v60, %v371_v59  ;;  %v382_v58 = vmul.f32 %v1406_v35, %v1406_v35  ;;  %v1010_v60 = vld [vmem:[%s1679_s4 + $0x18] sm:$0xff] }
 0x11e   :  { %v383_v37 = vmul.f32 %v367_v44, %v367_v44  ;;  %518 = vmatpush.bf16.msra.mxu1 %v1010_v60 }
 0x11f   :  { %v387_v61 = vadd.f32 %v386_v2, %v372_v14  ;;  %1035 = vmatpush.bf16.msrb.mxu3 %v1010_v60  ;;  %v1009_v2 = vld [vmem:[%s1679_s4 + $0x10] sm:$0xff] }
 0x121   :  { %v388_v6 = vadd.f32 %v387_v61, %v373_v19 }
 0x122   :  { %519 = vmatpush.bf16.msra.mxu1 %v1009_v2 }
 0x123   :  { %v389_v11 = vadd.f32 %v388_v6, %v374_v28  ;;  %1036 = vmatpush.bf16.msrb.mxu3 %v1009_v2  ;;  %v1008_v28 = vld [vmem:[%s1679_s4 + $0x8] sm:$0xff] }
 0x125   :  { %v390_v18 = vadd.f32 %v389_v11, %v375_v33  ;;  %v405_v33 = vmul.f32 %v1319_v45, %v1319_v45  ;;  %v406_v11 = vstv %s1425_s12 }
 0x126   :  { %520 = vmatpush.bf16.msra.mxu1 %v1008_v28 }
 0x127   :  { %v391_v23 = vadd.f32 %v390_v18, %v376_v17  ;;  %1037 = vmatpush.bf16.msrb.mxu3 %v1008_v28 }
 0x129   :  { %v392_v30 = vadd.f32 %v391_v23, %v377_v22  ;;  %v407_v22 = vmul.f32 %v406_v11, %v405_v33 }
 0x12a   :  { %521 = vmatpush.bf16.msra.mxu1 %v1007_v13 }
 0x12b   :  { %v393_v34 = vadd.f32 %v392_v30, %v378_v29  ;;  %1038 = vmatpush.bf16.msrb.mxu3 %v1007_v13 }
 0x12d   :  { %v394_v38 = vadd.f32 %v393_v34, %v379_v31 }
 0x12f   :  { %v395_v52 = vadd.f32 %v394_v38, %v380_v16 }
 0x131   :  { %v396_v55 = vadd.f32 %v395_v52, %v381_v21 }
 0x133   :  { %v397_v59 = vadd.f32 %v396_v55, %v382_v58 }
 0x135   :  { %v398_v14 = vadd.f32 %v397_v59, %v383_v37 }
 0x137   :  { %v399_v27 = vrot.slane %v398_v14, 4 }
 0x139   :  { %v400_v19 = vadd.f32 %v399_v27, %v398_v14 }
 0x13b   :  { %v401_v61 = vrot.slane %v400_v19, 2 }
 0x13d   :  { %v402_v6 = vadd.f32 %v401_v61, %v400_v19 }
 0x13f   :  { %v403_v17 = vrot.slane %v402_v6, 1 }
 0x141   :  { %v404_v18 = vadd.f32 %v403_v17, %v402_v6 }
 0x143   :  { %v408_v23 = vsub.f32 %v404_v18, %v407_v22 }
 0x145   :  { %v409_v26 = vmul.f32 %v408_v23, %v1316_v42 }
 0x147   :  { %v410_v29 = vmax.f32 %v409_v26, 0.0 }
 0x149   :  { %v411_v30 = vadd.f32 1e-05, %v410_v29 }
 0x14b   :  { %1055 = vrsqrt.f32 %v411_v30  ;;  %vm418_vm5 = vweird.f32 %v411_v30 }
 0x151   :  { %v1056_v45 = vpop.eup %1055 }
 0x152   :  { %v413_v31 = vmul.f32 %v1056_v45, %v411_v30  ;;  %vm419_vm4 = vweird.f32 %v1056_v45 }
 0x153   :  { %vm420_vm6 = vmor %vm418_vm5, %vm419_vm4 }
 0x154   :  { %v414_v34 = vmul.f32 %v1056_v45, %v413_v31 }
 0x156   :  { %v415_v40 = vmul.f32 0.5, %v414_v34 }
 0x158   :  { %v416_v16 = vsub.f32 1.5, %v415_v40 }
 0x15a   :  { %v417_v38 = vmul.f32 %v1056_v45, %v416_v16 }
 0x15c   :  { %v421_v21 = vsel %vm420_vm6, %v1056_v45, %v417_v38 }
 0x15d   :  { %v422_v52 = vmul.f32 %v421_v21, %v1323_v50  ;;  %v423_v53 = vmul.f32 %v421_v21, %v1327_v46  ;;  %v434_v58 = vmul.f32 %v421_v21, %v1395_v39  ;;  %v435_v55 = vmul.f32 %v421_v21, %v365_v12 }
 0x15e   :  { %v424_v60 = vmul.f32 %v421_v21, %v1331_v48  ;;  %v425_v14 = vmul.f32 %v421_v21, %v1339_v54  ;;  %v436_v27 = vmul.f32 %v421_v21, %v1406_v35  ;;  %v437_v2 = vmul.f32 %v421_v21, %v367_v44 }
 0x15f   :  { %v438_v37 = vpack.c.bf16 %v423_v53, %v422_v52  ;;  %v444_v59 = vpack.c.bf16 %v435_v55, %v434_v58  ;;  %v426_v50 = vmul.f32 %v421_v21, %v1343_v0  ;;  %v427_v46 = vmul.f32 %v421_v21, %v1349_v1 }
 0x160   :  { %v439_v19 = vpack.c.bf16 %v425_v14, %v424_v60  ;;  %v445_v61 = vpack.c.bf16 %v437_v2, %v436_v27  ;;  %v428_v12 = vmul.f32 %v421_v21, %v1355_v8  ;;  %v429_v28 = vmul.f32 %v421_v21, %v1361_v3 }
 0x161   :  { %522 = vmatmul.bf16.vlgmr.msra.gmra.mxu1 %v438_v37  ;;  %552 = vmatmul.bf16.vlgmr.msrb.gmra.mxu3 %v444_v59  ;;  %v440_v39 = vpack.c.bf16 %v427_v46, %v426_v50  ;;  %v430_v54 = vmul.f32 %v421_v21, %v1367_v5  ;;  %v431_v35 = vmul.f32 %v421_v21, %v1373_v9  ;;  %v1051_v5 = vld [vmem:[%s1680_s5] ss:$0 sm:$0xff] }
 0x162   :  { %v441_v48 = vpack.c.bf16 %v429_v28, %v428_v12  ;;  %v432_v6 = vmul.f32 %v421_v21, %v1382_v43  ;;  %v433_v0 = vmul.f32 %v421_v21, %v1387_v49 }
 0x163   :  { %v442_v44 = vpack.c.bf16 %v431_v35, %v430_v54 }
 0x164   :  { %v443_v33 = vpack.c.bf16 %v433_v0, %v432_v6 }
 0x171   :  { %527 = vmatmul.bf16.gmra.mxu1 %v439_v19  ;;  %557 = vmatmul.bf16.gmra.mxu3 %v445_v61 }
 0x181   :  { %532 = vmatmul.bf16.gmra.mxu1 %v440_v39 }
 0x191   :  { %537 = vmatmul.bf16.gmra.mxu1 %v441_v48 }
 0x1a1   :  { %542 = vmatmul.bf16.gmra.mxu1 %v442_v44 }
 0x1b1   :  { %547 = vmatmul.bf16.gmra.mxu1 %v443_v33 }
 0x1de   :  { %v523_v1 = vpop.f32.mrf.mxu1 }
 0x1df   :  { %v524_v43 = vadd.f32 %v1051_v5, %v523_v1 }
 0x1e1   :  { %v563_v31 = vmax.f32 %v524_v43, 0.0 }
 0x1e3   :  { %v1460_v58 = vmul.f32 %v1189_v56, %v563_v31 }
 0x1e4   :  { %v553_v26 = vpop.f32.mrf.mxu3 }
 0x1e5   :  { %v554_v1 = vadd.f32 %v1051_v5, %v553_v26 }
 0x1e6   :  { %v525_v13 = vpop.f32.mrf.mxu1 }
 0x1e7   :  { %v526_v9 = vadd.f32 %v1051_v5, %v525_v13 }
 0x1e9   :  { %v564_v49 = vmax.f32 %v526_v9, 0.0 }
 0x1eb   :  { %v1457_v38 = vmul.f32 %v1183_v51, %v564_v49 }
 0x1ec   :  { %v555_v16 = vpop.f32.mrf.mxu3 }
 0x1ed   :  { %v595_v60 = vadd.f32 %v1457_v38, %v1460_v58 }
 0x1ee   :  { %v528_v17 = vpop.f32.mrf.mxu1 }
 0x1ef   :  { %v529_v30 = vadd.f32 %v1051_v5, %v528_v17 }
 0x1f1   :  { %v565_v34 = vmax.f32 %v529_v30, 0.0 }
 0x1f3   :  { %v1463_v55 = vmul.f32 %v1192_v57, %v565_v34 }
 0x1f4   :  { %v558_v12 = vpop.f32.mrf.mxu3 }
 0x1f5   :  { %v596_v2 = vadd.f32 %v595_v60, %v1463_v55  ;;  %v559_v26 = vadd.f32 %v1051_v5, %v558_v12 }
 0x1f6   :  { %v530_v8 = vpop.f32.mrf.mxu1 }
 0x1f7   :  { %v531_v45 = vadd.f32 %v1051_v5, %v530_v8  ;;  %v556_v8 = vadd.f32 %v1051_v5, %v555_v16  ;;  %v577_v31 = vmax.f32 %v559_v26, 0.0 }
 0x1f9   :  { %v566_v21 = vmax.f32 %v531_v45, 0.0  ;;  %v576_v43 = vmax.f32 %v556_v8, 0.0 }
 0x1fb   :  { %v1468_v14 = vmul.f32 %v1200_v62, %v566_v21  ;;  %v1517_v16 = vmul.f32 %v1303_v15, %v576_v43 }
 0x1fd   :  { %v597_v57 = vadd.f32 %v596_v2, %v1468_v14  ;;  %v1016_v2 = vld [vmem:[%s1681_s6 + $0x8] sm:$0xff] }
 0x1fe   :  { %v533_v18 = vpop.f32.mrf.mxu1 }
 0x1ff   :  { %v534_v40 = vadd.f32 %v1051_v5, %v533_v18 }
 0x201   :  { %v567_v37 = vmax.f32 %v534_v40, 0.0  ;;  %v1020_v40 = vld [vmem:[%s1681_s6 + $0x28] sm:$0xff] }
 0x203   :  { %v1472_v19 = vmul.f32 %v1211_v4, %v567_v37 }
 0x205   :  { %v598_v62 = vadd.f32 %v597_v57, %v1472_v19  ;;  %v1015_v57 = vld [vmem:[%s1681_s6] sm:$0xff] }
 0x206   :  { %v535_v3 = vpop.f32.mrf.mxu1 }
 0x207   :  { %v536_v52 = vadd.f32 %v1051_v5, %v535_v3 }
 0x209   :  { %v568_v27 = vmax.f32 %v536_v52, 0.0  ;;  %v1019_v52 = vld [vmem:[%s1681_s6 + $0x20] sm:$0xff] }
 0x20b   :  { %v1476_v50 = vmul.f32 %v1221_v10, %v568_v27  ;;  %v1017_v27 = vld [vmem:[%s1681_s6 + $0x10] sm:$0xff] }
 0x20d   :  { %v599_v4 = vadd.f32 %v598_v62, %v1476_v50 }
 0x20e   :  { %v538_v22 = vpop.f32.mrf.mxu1 }
 0x20f   :  { %v539_v59 = vadd.f32 %v1051_v5, %v538_v22  ;;  %v560_v22 = vpop.f32.mrf.mxu3 }
 0x211   :  { %v569_v56 = vmax.f32 %v539_v59, 0.0 }
 0x213   :  { %v1480_v48 = vmul.f32 %v1238_v20, %v569_v56 }
 0x215   :  { %v600_v10 = vadd.f32 %v599_v4, %v1480_v48 }
 0x216   :  { %v540_v23 = vpop.f32.mrf.mxu1 }
 0x217   :  { %v541_v51 = vadd.f32 %v1051_v5, %v540_v23  ;;  %v575_v23 = vmax.f32 %v554_v1, 0.0 }
 0x219   :  { %v570_v46 = vmax.f32 %v541_v51, 0.0  ;;  %v1510_v45 = vmul.f32 %v1296_v7, %v575_v23 }
 0x21b   :  { %v1484_v44 = vmul.f32 %v1245_v25, %v570_v46 }
 0x21d   :  { %v601_v13 = vadd.f32 %v600_v10, %v1484_v44 }
 0x21e   :  { %v543_v29 = vpop.f32.mrf.mxu1 }
 0x21f   :  { %v544_v61 = vadd.f32 %v1051_v5, %v543_v29 }
 0x221   :  { %v571_v54 = vmax.f32 %v544_v61, 0.0 }
 0x223   :  { %v1488_v0 = vmul.f32 %v1254_v32, %v571_v54  ;;  %v1022_v32 = vld [vmem:[%s1681_s6 + $0x38] sm:$0xff] }
 0x224   :  { %778 = vmatpush.bf16.msra.mxu2 %v1022_v32  ;;  %1039 = vmatpush.bf16.msra.mxu3 %v1022_v32 }
 0x225   :  { %v602_v18 = vadd.f32 %v601_v13, %v1488_v0 }
 0x226   :  { %v545_v53 = vpop.f32.mrf.mxu1 }
 0x227   :  { %v546_v39 = vadd.f32 %v1051_v5, %v545_v53 }
 0x229   :  { %v572_v6 = vmax.f32 %v546_v39, 0.0 }
 0x22b   :  { %v1492_v20 = vmul.f32 %v1263_v41, %v572_v6  ;;  %v1021_v41 = vld [vmem:[%s1681_s6 + $0x30] sm:$0xff] }
 0x22c   :  { %779 = vmatpush.bf16.msra.mxu2 %v1021_v41  ;;  %1040 = vmatpush.bf16.msra.mxu3 %v1021_v41 }
 0x22d   :  { %v603_v9 = vadd.f32 %v602_v18, %v1492_v20 }
 0x22e   :  { %v548_v28 = vpop.f32.mrf.mxu1 }
 0x22f   :  { %v549_v35 = vadd.f32 %v1051_v5, %v548_v28 }
 0x230   :  { %780 = vmatpush.bf16.msra.mxu2 %v1020_v40  ;;  %1041 = vmatpush.bf16.msra.mxu3 %v1020_v40 }
 0x231   :  { %v573_v33 = vmax.f32 %v549_v35, 0.0 }
 0x233   :  { %v1496_v25 = vmul.f32 %v1273_v47, %v573_v33  ;;  %v561_v47 = vadd.f32 %v1051_v5, %v560_v22 }
 0x234   :  { %781 = vmatpush.bf16.msra.mxu2 %v1019_v52  ;;  %1042 = vmatpush.bf16.msra.mxu3 %v1019_v52 }
 0x235   :  { %v604_v30 = vadd.f32 %v603_v9, %v1496_v25 }
 0x236   :  { %v550_v17 = vpop.f32.mrf.mxu1 }
 0x237   :  { %v551_v3 = vadd.f32 %v1051_v5, %v550_v17  ;;  %v578_v5 = vmax.f32 %v561_v47, 0.0 }
 0x239   :  { %v574_v29 = vmax.f32 %v551_v3, 0.0  ;;  %v1528_v53 = vmul.f32 %v1312_v24, %v578_v5 }
 0x23b   :  { %v1507_v49 = vmul.f32 %v1290_v63, %v574_v29  ;;  %v1521_v63 = vmul.f32 %v1308_v36, %v577_v31  ;;  %v1018_v36 = vld [vmem:[%s1681_s6 + $0x18] sm:$0xff] }
 0x23c   :  { %782 = vmatpush.bf16.msra.mxu2 %v1018_v36  ;;  %1043 = vmatpush.bf16.msra.mxu3 %v1018_v36 }
 0x23d   :  { %v605_v34 = vadd.f32 %v604_v30, %v1507_v49 }
 0x23f   :  { %v606_v21 = vadd.f32 %v605_v34, %v1510_v45 }
 0x240   :  { %783 = vmatpush.bf16.msra.mxu2 %v1017_v27  ;;  %1044 = vmatpush.bf16.msra.mxu3 %v1017_v27 }
 0x241   :  { %v607_v7 = vadd.f32 %v606_v21, %v1517_v16 }
 0x243   :  { %v608_v15 = vadd.f32 %v607_v7, %v1521_v63 }
 0x244   :  { %784 = vmatpush.bf16.msra.mxu2 %v1016_v2  ;;  %1045 = vmatpush.bf16.msra.mxu3 %v1016_v2 }
 0x245   :  { %v609_v37 = vadd.f32 %v608_v15, %v1528_v53 }
 0x247   :  { %v610_v59 = vrot.slane %v609_v37, 4 }
 0x248   :  { %785 = vmatpush.bf16.msra.mxu2 %v1015_v57  ;;  %1046 = vmatpush.bf16.msra.mxu3 %v1015_v57 }
 0x249   :  { %v611_v60 = vadd.f32 %v610_v59, %v609_v37 }
 0x24b   :  { %v612_v24 = vrot.slane %v611_v60, 2 }
 0x24d   :  { %v613_v51 = vadd.f32 %v612_v24, %v611_v60 }
 0x24f   :  { %v614_v56 = vrot.slane %v613_v51, 1 }
 0x251   :  { %v615_v61 = vadd.f32 %v614_v56, %v613_v51 }
 0x253   :  { %v616_v46 = vmul.f32 %v615_v61, %v1316_v42 }
 0x255   :  { %v1546_v39 = vsub.f32 %v1460_v58, %v616_v46  ;;  %v1549_v12 = vsub.f32 %v1457_v38, %v616_v46  ;;  %v1552_v28 = vsub.f32 %v1463_v55, %v616_v46  ;;  %v1559_v35 = vsub.f32 %v1468_v14, %v616_v46 }
 0x256   :  { %v1562_v4 = vsub.f32 %v1472_v19, %v616_v46  ;;  %v1567_v6 = vsub.f32 %v1476_v50, %v616_v46  ;;  %v1572_v33 = vsub.f32 %v1480_v48, %v616_v46  ;;  %v1577_v19 = vsub.f32 %v1484_v44, %v616_v46 }
 0x257   :  { %v633_v62 = vmul.f32 %v1546_v39, %v1546_v39  ;;  %v634_v54 = vmul.f32 %v1549_v12, %v1549_v12  ;;  %v635_v58 = vmul.f32 %v1552_v28, %v1552_v28  ;;  %v636_v55 = vmul.f32 %v1559_v35, %v1559_v35 }
 0x258   :  { %v637_v14 = vmul.f32 %v1562_v4, %v1562_v4  ;;  %v638_v13 = vmul.f32 %v1567_v6, %v1567_v6  ;;  %v1582_v50 = vsub.f32 %v1488_v0, %v616_v46  ;;  %v639_v8 = vmul.f32 %v1572_v33, %v1572_v33 }
 0x259   :  { %v649_v38 = vadd.f32 %v634_v54, %v633_v62  ;;  %v1587_v48 = vsub.f32 %v1492_v20, %v616_v46  ;;  %v640_v3 = vmul.f32 %v1577_v19, %v1577_v19  ;;  %v1592_v44 = vsub.f32 %v1496_v25, %v616_v46 }
 0x25a   :  { %v641_v22 = vmul.f32 %v1582_v50, %v1582_v50  ;;  %v1597_v0 = vsub.f32 %v1507_v49, %v616_v46  ;;  %v629_v20 = vsub.f32 %v1510_v45, %v616_v46  ;;  %v630_v43 = vsub.f32 %v1517_v16, %v616_v46 }
 0x25b   :  { %v650_v10 = vadd.f32 %v649_v38, %v635_v58  ;;  %v642_v26 = vmul.f32 %v1587_v48, %v1587_v48  ;;  %v643_v29 = vmul.f32 %v1592_v44, %v1592_v44  ;;  %v631_v30 = vsub.f32 %v1521_v63, %v616_v46 }
 0x25c   :  { %v644_v25 = vmul.f32 %v1597_v0, %v1597_v0  ;;  %v645_v49 = vmul.f32 %v629_v20, %v629_v20  ;;  %v632_v34 = vsub.f32 %v1528_v53, %v616_v46  ;;  %v646_v40 = vmul.f32 %v630_v43, %v630_v43 }
 0x25d   :  { %v651_v1 = vadd.f32 %v650_v10, %v636_v55  ;;  %v647_v45 = vmul.f32 %v631_v30, %v631_v30  ;;  %v670_v16 = vmul.f32 %v616_v46, %v616_v46 }
 0x25e   :  { %v648_v7 = vmul.f32 %v632_v34, %v632_v34 }
 0x25f   :  { %v652_v17 = vadd.f32 %v651_v1, %v637_v14  ;;  %v671_v63 = vmul.f32 %v670_v16, %v406_v11 }
 0x261   :  { %v653_v18 = vadd.f32 %v652_v17, %v638_v13 }
 0x263   :  { %v654_v32 = vadd.f32 %v653_v18, %v639_v8 }
 0x265   :  { %v655_v23 = vadd.f32 %v654_v32, %v640_v3 }
 0x267   :  { %v656_v9 = vadd.f32 %v655_v23, %v641_v22 }
 0x269   :  { %v657_v41 = vadd.f32 %v656_v9, %v642_v26 }
 0x26b   :  { %v658_v47 = vadd.f32 %v657_v41, %v643_v29 }
 0x26d   :  { %v659_v31 = vadd.f32 %v658_v47, %v644_v25 }
 0x26f   :  { %v660_v5 = vadd.f32 %v659_v31, %v645_v49 }
 0x271   :  { %v661_v21 = vadd.f32 %v660_v5, %v646_v40 }
 0x273   :  { %v662_v52 = vadd.f32 %v661_v21, %v647_v45 }
 0x275   :  { %v663_v15 = vadd.f32 %v662_v52, %v648_v7 }
 0x277   :  { %v664_v37 = vrot.slane %v663_v15, 4 }
 0x279   :  { %v665_v36 = vadd.f32 %v664_v37, %v663_v15 }
 0x27b   :  { %v666_v59 = vrot.slane %v665_v36, 2 }
 0x27d   :  { %v667_v60 = vadd.f32 %v666_v59, %v665_v36 }
 0x27f   :  { %v668_v27 = vrot.slane %v667_v60, 1 }
 0x281   :  { %v669_v24 = vadd.f32 %v668_v27, %v667_v60 }
 0x283   :  { %v672_v51 = vsub.f32 %v669_v24, %v671_v63 }
 0x285   :  { %v673_v2 = vmul.f32 %v672_v51, %v1316_v42 }
 0x287   :  { %v674_v53 = vmax.f32 %v673_v2, 0.0 }
 0x289   :  { %v675_v56 = vadd.f32 1e-05, %v674_v53 }
 0x28b   :  { %1057 = vrsqrt.f32 %v675_v56  ;;  %vm682_vm8 = vweird.f32 %v675_v56 }
 0x291   :  { %v1058_v61 = vpop.eup %1057 }
 0x292   :  { %v677_v57 = vmul.f32 %v1058_v61, %v675_v56  ;;  %vm683_vm7 = vweird.f32 %v1058_v61 }
 0x293   :  { %vm684_vm9 = vmor %vm682_vm8, %vm683_vm7 }
 0x294   :  { %v678_v62 = vmul.f32 %v1058_v61, %v677_v57 }
 0x296   :  { %v679_v54 = vmul.f32 0.5, %v678_v62 }
 0x298   :  { %v680_v58 = vsub.f32 1.5, %v679_v54 }
 0x29a   :  { %v681_v38 = vmul.f32 %v1058_v61, %v680_v58 }
 0x29c   :  { %v685_v46 = vsel %vm684_vm9, %v1058_v61, %v681_v38 }
 0x29d   :  { %v686_v55 = vmul.f32 %v685_v46, %v1546_v39  ;;  %v687_v11 = vmul.f32 %v685_v46, %v1549_v12  ;;  %v698_v10 = vmul.f32 %v685_v46, %v629_v20  ;;  %v699_v14 = vmul.f32 %v685_v46, %v630_v43 }
 0x29e   :  { %v688_v13 = vmul.f32 %v685_v46, %v1552_v28  ;;  %v689_v17 = vmul.f32 %v685_v46, %v1559_v35  ;;  %v700_v8 = vmul.f32 %v685_v46, %v631_v30  ;;  %v701_v18 = vmul.f32 %v685_v46, %v632_v34 }
 0x29f   :  { %v702_v42 = vpack.c.bf16 %v687_v11, %v686_v55  ;;  %v708_v1 = vpack.c.bf16 %v699_v14, %v698_v10  ;;  %v690_v39 = vmul.f32 %v685_v46, %v1562_v4  ;;  %v691_v12 = vmul.f32 %v685_v46, %v1567_v6  ;;  %v1052_v6 = vld [vmem:[%s1682_s7] ss:$0 sm:$0xff] }
 0x2a0   :  { %v703_v3 = vpack.c.bf16 %v689_v17, %v688_v13  ;;  %v709_v32 = vpack.c.bf16 %v701_v18, %v700_v8  ;;  %v692_v23 = vmul.f32 %v685_v46, %v1572_v33  ;;  %v693_v26 = vmul.f32 %v685_v46, %v1577_v19 }
 0x2a1   :  { %786 = vmatmul.bf16.vlgmr.msra.gmra.mxu2 %v702_v42  ;;  %816 = vmatmul.bf16.vlgmr.msra.gmra.mxu3 %v708_v1  ;;  %v704_v22 = vpack.c.bf16 %v691_v12, %v690_v39  ;;  %v694_v28 = vmul.f32 %v685_v46, %v1582_v50  ;;  %v695_v35 = vmul.f32 %v685_v46, %v1587_v48 }
 0x2a2   :  { %v705_v9 = vpack.c.bf16 %v693_v26, %v692_v23  ;;  %v696_v29 = vmul.f32 %v685_v46, %v1592_v44  ;;  %v697_v4 = vmul.f32 %v685_v46, %v1597_v0 }
 0x2a3   :  { %v706_v20 = vpack.c.bf16 %v695_v35, %v694_v28 }
 0x2a4   :  { %v707_v41 = vpack.c.bf16 %v697_v4, %v696_v29 }
 0x2b1   :  { %791 = vmatmul.bf16.gmra.mxu2 %v703_v3  ;;  %821 = vmatmul.bf16.gmra.mxu3 %v709_v32 }
 0x2c1   :  { %796 = vmatmul.bf16.gmra.mxu2 %v704_v22 }
 0x2d1   :  { %801 = vmatmul.bf16.gmra.mxu2 %v705_v9 }
 0x2e1   :  { %806 = vmatmul.bf16.gmra.mxu2 %v706_v20 }
 0x2f1   :  { %811 = vmatmul.bf16.gmra.mxu2 %v707_v41 }
 0x324   :  { %v787_v33 = vpop.f32.mrf.mxu2  ;;  %v817_v19 = vpop.f32.mrf.mxu3 }
 0x325   :  { %v788_v25 = vadd.f32 %v1052_v6, %v787_v33  ;;  %v818_v43 = vadd.f32 %v1052_v6, %v817_v19 }
 0x327   :  { %827 = vst [vmem:[%s1683_s8] sm:$0xff] %v788_v25 }
 0x328   :  { %839 = vst [vmem:[%s1683_s8 + $0x60] sm:$0xff] %v818_v43 }
 0x32c   :  { %v789_v50 = vpop.f32.mrf.mxu2  ;;  %v819_v48 = vpop.f32.mrf.mxu3 }
 0x32d   :  { %v790_v44 = vadd.f32 %v1052_v6, %v789_v50  ;;  %v820_v0 = vadd.f32 %v1052_v6, %v819_v48 }
 0x32f   :  { %828 = vst [vmem:[%s1683_s8 + $0x8] sm:$0xff] %v790_v44 }
 0x330   :  { %840 = vst [vmem:[%s1683_s8 + $0x68] sm:$0xff] %v820_v0 }
 0x334   :  { %v792_v47 = vpop.f32.mrf.mxu2  ;;  %v822_v30 = vpop.f32.mrf.mxu3 }
 0x335   :  { %v793_v49 = vadd.f32 %v1052_v6, %v792_v47  ;;  %v823_v31 = vadd.f32 %v1052_v6, %v822_v30 }
 0x337   :  { %829 = vst [vmem:[%s1683_s8 + $0x10] sm:$0xff] %v793_v49 }
 0x338   :  { %841 = vst [vmem:[%s1683_s8 + $0x70] sm:$0xff] %v823_v31 }
 0x33c   :  { %v794_v34 = vpop.f32.mrf.mxu2  ;;  %v824_v40 = vpop.f32.mrf.mxu3 }
 0x33d   :  { %v795_v5 = vadd.f32 %v1052_v6, %v794_v34  ;;  %v825_v45 = vadd.f32 %v1052_v6, %v824_v40 }
 0x33f   :  { %830 = vst [vmem:[%s1683_s8 + $0x18] sm:$0xff] %v795_v5 }
 0x340   :  { %842 = vst [vmem:[%s1683_s8 + $0x78] sm:$0xff] %v825_v45 }
 0x344   :  { %v797_v21 = vpop.f32.mrf.mxu2 }
 0x345   :  { %v798_v7 = vadd.f32 %v1052_v6, %v797_v21 }
 0x347   :  { %831 = vst [vmem:[%s1683_s8 + $0x20] sm:$0xff] %v798_v7 }
 0x34c   :  { %v799_v52 = vpop.f32.mrf.mxu2 }
 0x34d   :  { %v800_v15 = vadd.f32 %v1052_v6, %v799_v52 }
 0x34f   :  { %832 = vst [vmem:[%s1683_s8 + $0x28] sm:$0xff] %v800_v15 }
 0x354   :  { %v802_v37 = vpop.f32.mrf.mxu2 }
 0x355   :  { %v803_v36 = vadd.f32 %v1052_v6, %v802_v37 }
 0x357   :  { %833 = vst [vmem:[%s1683_s8 + $0x30] sm:$0xff] %v803_v36 }
 0x35c   :  { %v804_v59 = vpop.f32.mrf.mxu2 }
 0x35d   :  { %v805_v60 = vadd.f32 %v1052_v6, %v804_v59 }
 0x35f   :  { %834 = vst [vmem:[%s1683_s8 + $0x38] sm:$0xff] %v805_v60 }
 0x364   :  { %v807_v16 = vpop.f32.mrf.mxu2 }
 0x365   :  { %v808_v27 = vadd.f32 %v1052_v6, %v807_v16 }
 0x367   :  { %835 = vst [vmem:[%s1683_s8 + $0x40] sm:$0xff] %v808_v27 }
 0x36c   :  { %v809_v24 = vpop.f32.mrf.mxu2 }
 0x36d   :  { %v810_v63 = vadd.f32 %v1052_v6, %v809_v24 }
 0x36f   :  { %836 = vst [vmem:[%s1683_s8 + $0x48] sm:$0xff] %v810_v63 }
 0x374   :  { %v812_v51 = vpop.f32.mrf.mxu2 }
 0x375   :  { %v813_v2 = vadd.f32 %v1052_v6, %v812_v51 }
 0x377   :  { %837 = vst [vmem:[%s1683_s8 + $0x50] sm:$0xff] %v813_v2 }
 0x37c   :  { %v814_v53 = vpop.f32.mrf.mxu2 }
 0x37d   :  { %v815_v56 = vadd.f32 %v1052_v6, %v814_v53 }
 0x37f   :  { %838 = vst [vmem:[%s1683_s8 + $0x58] sm:$0xff] %v815_v56 }

</bundles_post_ra>
